<compile_context>
chip_gen: v7x
topology: tpu7x:2x2x1
jax: 0.10.0
libtpu: 0.0.40
codegen_flags: <defaults>
</compile_context>

<pallas_src>
import functools
import numpy as np
import jax
import jax.numpy as jnp
from jax import lax
from jax.experimental import pallas as pl
from jax.experimental.pallas import tpu as pltpu


# ----------------------------------------------------------------------------
# Pallas kernel: fused complex channel mixing over tm block-diag-packed modes.
#   xr, xi : (tm*I, tn)        real / imag spectral rows, tokens on lanes
#   a, b   : (tm*2O, tm*I)     block-diagonal real weight matrices
#   o      : (tm*2O, tn)       per mode: [out_r (O rows); out_i (O rows)]
# ----------------------------------------------------------------------------
def _mix_kernel(xr_ref, xi_ref, a_ref, b_ref, o_ref):
    acc = jnp.dot(a_ref[...], xr_ref[...], preferred_element_type=jnp.float32)
    acc = acc + jnp.dot(b_ref[...], xi_ref[...], preferred_element_type=jnp.float32)
    o_ref[...] = acc.astype(o_ref.dtype)


def _round_up(x, m):
    return ((x + m - 1) // m) * m


def _choose_tm(n_modes, c_in, c_out, dtype, max_k=512, cap=32):
    """Largest divisor of n_modes that keeps sublane alignment and K = tm*I
    within a reasonable MXU fill."""
    sub = 16 if jnp.dtype(dtype).itemsize == 2 else 8

    def aligned(tm):
        # Full-array blocks are exempt from the (8,128) divisibility rule.
        return tm == n_modes or ((tm * c_in) % sub == 0 and (tm * 2 * c_out) % sub == 0)

    divs = [d for d in range(1, n_modes + 1) if n_modes % d == 0]
    good = [d for d in divs if aligned(d)]          # n_modes is always in `good`
    pref = [d for d in good if d <= cap and d * c_in <= max_k]
    if pref:
        return max(pref)
    return min(good)


def _choose_tn(n_tokens, tm, c_in, c_out, dtype,
               budget_bytes=20 * 1024 * 1024, max_tn=8192):
    """Largest lane tile (multiple of 128) that fits the double-buffered VMEM
    budget with <= ~12.5% token-padding waste."""
    itemsize = jnp.dtype(dtype).itemsize
    # Per lane column: xr + xi + out (double-buffered) + f32 accumulator.
    per_col = 2 * itemsize * (tm * 2 * c_in + tm * 2 * c_out) + 4 * tm * 2 * c_out
    w_bytes = 2 * 2 * (tm * 2 * c_out) * (tm * c_in) * itemsize  # A,B double-buffered
    avail = max(budget_bytes - w_bytes, 128 * per_col)
    tn_budget = max(128, (avail // per_col) // 128 * 128)

    n128 = _round_up(n_tokens, 128)
    hi = min(max_tn, tn_budget, n128)
    hi = max(128, hi // 128 * 128)
    for cand in range(hi, 0, -128):
        n_pad = _round_up(n128, cand)
        if n_pad - n128 <= max(n128 // 8, 128):
            return cand, n_pad
    return 128, n128


def _block_diag(w, tm):
    """w: (modes, R, C) -> (modes//tm, tm*R, tm*C), block-diagonal per group.
    Tiny; built in XLA."""
    n_modes, R, C = w.shape
    g = n_modes // tm
    w = w.reshape(g, tm, R, C)
    eye = jnp.eye(tm, dtype=w.dtype)
    wbd = jnp.einsum('jk,gjrc->gjrkc', eye, w)      # zero off-diagonal blocks
    return wbd.reshape(g, tm * R, tm * C)


def _mode_mix_pallas(xr2, xi2, a_bd, b_bd, tm, tn, n_modes, c_in, c_out):
    """xr2, xi2: (modes*I, Npad); a_bd, b_bd: (Gm, tm*2O, tm*I)
       -> (modes*2O, Npad), same dtype as xr2."""
    mi, n_pad = xr2.shape
    gm = n_modes // tm
    mo = n_modes * 2 * c_out
    grid = (n_pad // tn, gm)                         # token axis leads (megacore)

    itemsize = jnp.dtype(xr2.dtype).itemsize
    flops = 4 * (tm * 2 * c_out) * (tm * c_in) * n_pad * gm
    bytes_accessed = itemsize * (2 * mi * n_pad + mo * n_pad
                                 + 2 * (tm * 2 * c_out) * (tm * c_in) * gm * (n_pad // tn))

    return pl.pallas_call(
        _mix_kernel,
        out_shape=jax.ShapeDtypeStruct((mo, n_pad), xr2.dtype),
        grid_spec=pltpu.PrefetchScalarGridSpec(
            num_scalar_prefetch=0,
            grid=grid,
            in_specs=[
                pl.BlockSpec((tm * c_in, tn), lambda n, m: (m, n)),
                pl.BlockSpec((tm * c_in, tn), lambda n, m: (m, n)),
                pl.BlockSpec((None, tm * 2 * c_out, tm * c_in), lambda n, m: (m, 0, 0)),
                pl.BlockSpec((None, tm * 2 * c_out, tm * c_in), lambda n, m: (m, 0, 0)),
            ],
            out_specs=pl.BlockSpec((tm * 2 * c_out, tn), lambda n, m: (m, n))),
        compiler_params=pltpu.CompilerParams(
            dimension_semantics=("parallel", "parallel"),
            vmem_limit_bytes=48 * 1024 * 1024),
        cost_estimate=pl.CostEstimate(flops=int(flops), transcendentals=0,
                                      bytes_accessed=int(bytes_accessed)),
    )(xr2, xi2, a_bd, b_bd)


# ----------------------------------------------------------------------------
# One factorized spectral branch: rfft along `axis`, mix the first `modes`
# frequencies through the Pallas kernel, zero-pad, irfft back.
# ----------------------------------------------------------------------------
def _spectral_branch(x, w_r, w_i, axis, modes, compute_dtype):
    # x: (B, I, S1, S2, S3) f32 ; w_r, w_i: (I, O, modes) f32
    ndim = x.ndim
    S = x.shape[axis]
    c_in = x.shape[1]
    c_out = w_r.shape[1]
    if modes > S // 2 + 1:
        raise ValueError(f"modes={modes} exceeds rfft length {S // 2 + 1}")

    x_ft = jnp.fft.rfft(x, axis=axis, norm='ortho')               # complex64
    x_ft_m = lax.slice_in_dim(x_ft, 0, modes, axis=axis)          # keep low modes

    # Split real/imag + cast BEFORE the transpose (halves transpose write bytes,
    # no XLA concatenate of the big spectral tensor).
    xr = jnp.real(x_ft_m).astype(compute_dtype)
    xi = jnp.imag(x_ft_m).astype(compute_dtype)
    xr = jnp.moveaxis(xr, (axis, 1), (0, 1))                      # (modes, I, B, rest...)
    xi = jnp.moveaxis(xi, (axis, 1), (0, 1))
    lead = xr.shape
    n_tokens = int(np.prod(lead[2:]))
    xr2 = xr.reshape(modes * c_in, n_tokens)                      # free collapse
    xi2 = xi.reshape(modes * c_in, n_tokens)

    tm = _choose_tm(modes, c_in, c_out, compute_dtype)
    tn, n_pad = _choose_tn(n_tokens, tm, c_in, c_out, compute_dtype)
    if n_pad != n_tokens:
        xr2 = jnp.pad(xr2, ((0, 0), (0, n_pad - n_tokens)))
        xi2 = jnp.pad(xi2, ((0, 0), (0, n_pad - n_tokens)))

    # Real block-matrix form of the complex weight, then block-diag mode packing:
    #   A[m] = [wr^T; wi^T],  B[m] = [-wi^T; wr^T]   (each (2O, I))
    wrT = jnp.transpose(w_r, (2, 1, 0))                           # (modes, O, I)
    wiT = jnp.transpose(w_i, (2, 1, 0))
    a = jnp.concatenate([wrT, wiT], axis=1).astype(compute_dtype)   # (modes, 2O, I)
    b = jnp.concatenate([-wiT, wrT], axis=1).astype(compute_dtype)
    a_bd = _block_diag(a, tm)                                     # (Gm, tm*2O, tm*I)
    b_bd = _block_diag(b, tm)

    out2 = _mode_mix_pallas(xr2, xi2, a_bd, b_bd, tm, tn, modes, c_in, c_out)

    out = out2[:, :n_tokens].astype(jnp.float32)
    out = out.reshape((modes, 2, c_out) + tuple(lead[2:]))        # (modes, {r,i}, O, B, rest)
    out_c = lax.complex(out[:, 0], out[:, 1])                     # (modes, O, B, rest...)
    out_c = jnp.moveaxis(out_c, (0, 1), (axis, 1))                # (B, O, ..., modes@axis)

    pad = [(0, 0)] * ndim
    pad[axis] = (0, S // 2 + 1 - modes)                           # untouched high freqs
    out_ft = jnp.pad(out_c, pad)
    return jnp.fft.irfft(out_ft, n=S, axis=axis, norm='ortho').astype(jnp.float32)


def spectral_conv3d_ffno(x, fourier_weight, modes, compute_dtype=jnp.float32):
    """Forward pass of SpectralConv3d_FFNO.

    x              : (B, I, S1, S2, S3) float32
    fourier_weight : [(I, O, modes_x, 2), (I, O, modes_y, 2), (I, O, modes_z, 2)]
    modes          : (modes_x, modes_y, modes_z)
    compute_dtype  : Pallas kernel in/out dtype (float32 exact; bfloat16 opt-in
                     fast path; MXU accumulation is always float32)
    """
    modes_x, modes_y, modes_z = modes
    wx, wy, wz = fourier_weight

    # TODO(synk): when the three branches share (I, O, token) shapes their
    # mode-mixes could be concatenated along the mode axis into one pallas_call
    # (saves two launches and fixes degenerate mode axes for tiny mode counts);
    # kept as three calls so unequal spatial sizes never pay extra padding.
    xz = _spectral_branch(x, wz[..., 0], wz[..., 1], axis=4, modes=modes_z,
                          compute_dtype=compute_dtype)
    xy = _spectral_branch(x, wy[..., 0], wy[..., 1], axis=3, modes=modes_y,
                          compute_dtype=compute_dtype)
    xx = _spectral_branch(x, wx[..., 0], wx[..., 1], axis=2, modes=modes_x,
                          compute_dtype=compute_dtype)
    return xx + xy + xz


# ----------------------------------------------------------------------------
# Pure-JAX reference (same math, einsum instead of the Pallas kernel).
# ----------------------------------------------------------------------------
def _reference(x, fourier_weight, modes):
    modes_x, modes_y, modes_z = modes
    wx, wy, wz = [w[..., 0] + 1j * w[..., 1] for w in fourier_weight]

    def branch(w, axis, m, S):
        xf = jnp.fft.rfft(x, axis=axis, norm='ortho')
        xf_m = lax.slice_in_dim(xf, 0, m, axis=axis)
        eq = {2: 'bixyz,iox->boxyz', 3: 'bixyz,ioy->boxyz', 4: 'bixyz,ioz->boxyz'}[axis]
        out_m = jnp.einsum(eq, xf_m, w)
        pad = [(0, 0)] * 5
        pad[axis] = (0, S // 2 + 1 - m)
        return jnp.fft.irfft(jnp.pad(out_m, pad), n=S, axis=axis, norm='ortho')

    S1, S2, S3 = x.shape[2], x.shape[3], x.shape[4]
    return (branch(wx, 2, modes_x, S1) + branch(wy, 3, modes_y, S2)
            + branch(wz, 4, modes_z, S3)).astype(jnp.float32)


# ----------------------------------------------------------------------------
if __name__ == "__main__":
    key = jax.random.PRNGKey(0)

    B, I, O = 2, 4, 4
    S1 = S2 = S3 = 8
    modes = (4, 4, 4)   # each <= S//2 + 1 = 5

    k_x, k_wx, k_wy, k_wz = jax.random.split(key, 4)
    x = jax.random.normal(k_x, (B, I, S1, S2, S3), dtype=jnp.float32)

    # Deterministic xavier_normal_-style init for (I, O, n_modes, 2) weights.
    def xavier(k, n_modes):
        fan_in = O * n_modes * 2
        fan_out = I * n_modes * 2
        std = float(np.sqrt(2.0 / (fan_in + fan_out)))
        return std * jax.random.normal(k, (I, O, n_modes, 2), dtype=jnp.float32)

    fourier_weight = [xavier(k_wx, modes[0]),
                      xavier(k_wy, modes[1]),
                      xavier(k_wz, modes[2])]

    ref = jax.block_until_ready(_reference(x, fourier_weight, modes))

    # Exact path (f32 kernel in/out) -- tight tolerance.
    fwd_f32 = jax.jit(functools.partial(spectral_conv3d_ffno, modes=modes,
                                        compute_dtype=jnp.float32))
    out_f32 = jax.block_until_ready(fwd_f32(x, fourier_weight))
    np.testing.assert_allclose(np.asarray(out_f32), np.asarray(ref),
                               rtol=1e-4, atol=1e-4)

    # Fast path (bf16 kernel in/out, f32 MXU accumulation) -- loose tolerance.
    fwd_bf16 = jax.jit(functools.partial(spectral_conv3d_ffno, modes=modes,
                                         compute_dtype=jnp.bfloat16))
    out_bf16 = jax.block_until_ready(fwd_bf16(x, fourier_weight))
    np.testing.assert_allclose(np.asarray(out_bf16), np.asarray(ref),
                               rtol=5e-2, atol=5e-2)

    print("KERNEL_OK")
</pallas_src>

<mosaic_0001>
module attributes {stable_mosaic.version = 11 : i64} {
  func.func @_mix_kernel(%arg0: i32, %arg1: i32, %arg2: memref<16x128xf32, #tpu.memory_space<vmem>>, %arg3: memref<16x128xf32, #tpu.memory_space<vmem>>, %arg4: memref<1x32x16xf32, #tpu.memory_space<vmem>>, %arg5: memref<1x32x16xf32, #tpu.memory_space<vmem>>, %arg6: memref<32x128xf32, #tpu.memory_space<vmem>>) attributes {dimension_semantics = [#tpu.dimension_semantics<parallel>, #tpu.dimension_semantics<parallel>], iteration_bounds = array<i64: 1, 1>, scalar_prefetch = 0 : i64, scratch_operands = 0 : i64, tpu.core_type = #tpu.core_type<tc>, window_params = [{transform_indices = @transform_0, window_bounds = array<i64: 16, 128>}, {transform_indices = @transform_1, window_bounds = array<i64: 16, 128>}, {transform_indices = @transform_2, window_bounds = array<i64: 1, 32, 16>}, {transform_indices = @transform_3, window_bounds = array<i64: 1, 32, 16>}, {transform_indices = @transform_4, window_bounds = array<i64: 32, 128>}]} {
    %c0 = arith.constant 0 : index
    %c0_0 = arith.constant 0 : index
    %c0_1 = arith.constant 0 : index
    %0 = vector.load %arg4[%c0, %c0_0, %c0_1] : memref<1x32x16xf32, #tpu.memory_space<vmem>>, vector<1x32x16xf32>
    %1 = vector.shape_cast %0 : vector<1x32x16xf32> to vector<32x16xf32>
    %c0_2 = arith.constant 0 : index
    %c0_3 = arith.constant 0 : index
    %2 = vector.load %arg2[%c0_2, %c0_3] : memref<16x128xf32, #tpu.memory_space<vmem>>, vector<16x128xf32>
    %cst = arith.constant dense<0.000000e+00> : vector<32x128xf32>
    %3 = tpu.matmul %1, %2, %cst {dimension_numbers = #tpu.dot_dimension_numbers<[1], [0], [0], [1], [0, 0, 1, 1], [], []>} : vector<32x16xf32>, vector<16x128xf32>, vector<32x128xf32> -> vector<32x128xf32>
    %c0_4 = arith.constant 0 : index
    %c0_5 = arith.constant 0 : index
    %c0_6 = arith.constant 0 : index
    %4 = vector.load %arg5[%c0_4, %c0_5, %c0_6] : memref<1x32x16xf32, #tpu.memory_space<vmem>>, vector<1x32x16xf32>
    %5 = vector.shape_cast %4 : vector<1x32x16xf32> to vector<32x16xf32>
    %c0_7 = arith.constant 0 : index
    %c0_8 = arith.constant 0 : index
    %6 = vector.load %arg3[%c0_7, %c0_8] : memref<16x128xf32, #tpu.memory_space<vmem>>, vector<16x128xf32>
    %cst_9 = arith.constant dense<0.000000e+00> : vector<32x128xf32>
    %7 = tpu.matmul %5, %6, %cst_9 {dimension_numbers = #tpu.dot_dimension_numbers<[1], [0], [0], [1], [0, 0, 1, 1], [], []>} : vector<32x16xf32>, vector<16x128xf32>, vector<32x128xf32> -> vector<32x128xf32>
    %8 = arith.addf %3, %7 : vector<32x128xf32>
    %c0_10 = arith.constant 0 : index
    %c0_11 = arith.constant 0 : index
    %9 = vector.load %arg6[%c0_10, %c0_11] : memref<32x128xf32, #tpu.memory_space<vmem>>, vector<32x128xf32>
    tpu.vector_store %arg6[%c0_10, %c0_11], %8 {strides = array<i32>} : memref<32x128xf32, #tpu.memory_space<vmem>>, vector<32x128xf32>,
    return
  }
  func.func @transform_0(%arg0: i32, %arg1: i32) -> (i32, i32) {
    %c0_i32 = arith.constant 0 : i32
    return %arg1, %arg0 : i32, i32
  }
  func.func @transform_1(%arg0: i32, %arg1: i32) -> (i32, i32) {
    %c0_i32 = arith.constant 0 : i32
    return %arg1, %arg0 : i32, i32
  }
  func.func @transform_2(%arg0: i32, %arg1: i32) -> (i32, i32, i32) {
    %c0_i32 = arith.constant 0 : i32
    %c0_i32_0 = arith.constant 0 : i32
    %c0_i32_1 = arith.constant 0 : i32
    return %arg1, %c0_i32, %c0_i32_0 : i32, i32, i32
  }
  func.func @transform_3(%arg0: i32, %arg1: i32) -> (i32, i32, i32) {
    %c0_i32 = arith.constant 0 : i32
    %c0_i32_0 = arith.constant 0 : i32
    %c0_i32_1 = arith.constant 0 : i32
    return %arg1, %c0_i32, %c0_i32_0 : i32, i32, i32
  }
  func.func @transform_4(%arg0: i32, %arg1: i32) -> (i32, i32) {
    %c0_i32 = arith.constant 0 : i32
    return %arg1, %arg0 : i32, i32
  }
}

</mosaic_0001>

<bundles_post_ra>
// kernel: neg.3
= control target key start
LH: loop header
LB: loop body
LE: loop exit
PB: predicated region body
PF: predicated region fallthrough
CT: control target
= control target key end

     0   :  { %s72_s0 = inlined_call_operand.vmem [shape: f32[4,4,4], index: 0, kind: input, shape index: {}]   ;;  %s73_s1 = inlined_call_operand.vmem [shape: f32[4,4,4], index: 1, kind: output, shape index: {}]  }
   0x1   :  { %v2_v0 = vld [vmem:[%s72_s0] sm:$0xf]  ;;  %v32_v1 = vld [vmem:[%s72_s0 + $0x4] sm:$0xf]  ;;  %v34_v2 = vld [vmem:[%s72_s0 + $0x8] sm:$0xf] }
   0x2   :  { %v5_v3 = vxor.u32 2147483648, %v2_v0  ;;  %v12_v4 = vxor.u32 2147483648, %v32_v1  ;;  %v20_v5 = vxor.u32 2147483648, %v34_v2  ;;  %v36_v6 = vld [vmem:[%s72_s0 + $0xc] sm:$0xf] }
   0x3   :  { %v28_v7 = vxor.u32 2147483648, %v36_v6 }
   0x4   :  { %7 = vst [vmem:[%s73_s1] sm:$0xf] %v5_v3  ;;  %33 = vst [vmem:[%s73_s1 + $0x4] sm:$0xf] %v12_v4 }
   0x5   :  { %35 = vst [vmem:[%s73_s1 + $0x8] sm:$0xf] %v20_v5  ;;  %37 = vst [vmem:[%s73_s1 + $0xc] sm:$0xf] %v28_v7 }

// kernel: spectral_conv3d_ffno.3
= control target key start
LH: loop header
LB: loop body
LE: loop exit
PB: predicated region body
PF: predicated region fallthrough
CT: control target
= control target key end

     0   :  { %vm29_vm0 = vcmask 130048   ;;  %s365_s1 = inlined_call_operand.vmem [shape: f32[16,128], index: 1, kind: input, shape index: {}]   ;;  %s366_s0 = inlined_call_operand.vmem [shape: f32[16,128], index: 0, kind: input, shape index: {}]   ;;  %s367_s3 = inlined_call_operand.vmem [shape: f32[1,32,16], index: 3, kind: input, shape index: {}]   ;;  %s368_s2 = inlined_call_operand.vmem [shape: f32[1,32,16], index: 2, kind: input, shape index: {}]   ;;  %s369_s4 = inlined_call_operand.vmem [shape: f32[32,128], index: 4, kind: output, shape index: {}]  }
   0x1   :  { %v27_v0 = vld [vmem:[%s365_s1] sm:$0xff]  ;;  %v28_v1 = vld [vmem:[%s365_s1 + $0x8] sm:$0xff]  ;;  %v25_v10 = vld [vmem:[%s367_s3 + $0x10] sm:$0xff] }
   0x2   :  { %v21_v2 = vld [vmem:[%s366_s0] sm:$0xff]  ;;  %v272_v3 = vpack.c.bf16 %v28_v1, %v27_v0  ;;  %v22_v4 = vld [vmem:[%s366_s0 + $0x8] sm:$0xff]  ;;  %v19_v11 = vld [vmem:[%s368_s2 + $0x10] sm:$0xff] }
   0x3   :  { %v23_v5 = vld [vmem:[%s367_s3] sm:$0xff]  ;;  %v276_v7 = vpack.c.bf16 %v22_v4, %v21_v2  ;;  %v24_v8 = vld [vmem:[%s367_s3 + $0x8] sm:$0xff]  ;;  %v26_v12 = vld [vmem:[%s367_s3 + $0x18] sm:$0xff] }
   0x4   :  { %v17_v6 = vld [vmem:[%s368_s2] sm:$0xff]  ;;  %256 = vmatprep.mubr.msk.f32.mxu1 %vm29_vm0, %v23_v5  ;;  %273 = vmatprep.subr.bf16.mxu1 %v272_v3  ;;  %v18_v9 = vld [vmem:[%s368_s2 + $0x8] sm:$0xff]  ;;  %v20_v13 = vld [vmem:[%s368_s2 + $0x18] sm:$0xff] }
   0x5   :  { %266 = vmatprep.mubr.msk.f32.mxu0 %vm29_vm0, %v17_v6  ;;  %277 = vmatprep.subr.bf16.mxu0 %v276_v7 }
   0x6   :  { %275 = vmatpush3.bf16.msra.mxu1 %v272_v3  ;;  %279 = vmatpush3.bf16.msra.mxu0 %v276_v7 }
   0x9   :  { %257 = vmatmul.mubr.msk.f32.vlgmr.msra.gmra.mrb[0].mxu1 %vm29_vm0, %v24_v8  ;;  %267 = vmatmul.mubr.msk.f32.vlgmr.msra.gmra.mrb[0].mxu0 %vm29_vm0, %v18_v9 }
   0xa   :  { %259 = vmatprep.mubr.msk.f32.mxu1 %vm29_vm0, %v25_v10  ;;  %269 = vmatprep.mubr.msk.f32.mxu0 %vm29_vm0, %v19_v11 }
   0xd   :  { %260 = vmatmul.mubr.msk.f32.gmra.mrb[2].mxu1 %vm29_vm0, %v26_v12  ;;  %270 = vmatmul.mubr.msk.f32.gmra.mrb[2].mxu0 %vm29_vm0, %v20_v13 }
  0xdc   :  { %v258_v14 = vpop.f32.mrb[0].mxu1  ;;  %v268_v15 = vpop.f32.mrb[0].mxu0 }
  0xdd   :  { %v108_v16 = vpop.f32.mrb[1].mxu1  ;;  %v211_v17 = vadd.f32 %v268_v15, %v258_v14  ;;  %v205_v18 = vpop.f32.mrb[1].mxu0 }
  0xde   :  { %v206_v19 = vadd.f32 %v205_v18, %v108_v16 }
  0xdf   :  { %225 = vst [vmem:[%s369_s4 + $0x8] sm:$0xff] %v211_v17 }
  0xe0   :  { %v261_v20 = vpop.f32.mrb[2].mxu1  ;;  %224 = vst [vmem:[%s369_s4] sm:$0xff] %v206_v19  ;;  %v271_v21 = vpop.f32.mrb[2].mxu0 }
  0xe1   :  { %v118_v22 = vpop.f32.mrb[3].mxu1  ;;  %v221_v23 = vadd.f32 %v271_v21, %v261_v20  ;;  %v215_v24 = vpop.f32.mrb[3].mxu0 }
  0xe2   :  { %v216_v25 = vadd.f32 %v215_v24, %v118_v22 }
  0xe3   :  { %227 = vst [vmem:[%s369_s4 + $0x18] sm:$0xff] %v221_v23 }
  0xe4   :  { %226 = vst [vmem:[%s369_s4 + $0x10] sm:$0xff] %v216_v25 }

// kernel: reverse.7
= control target key start
LH: loop header
LB: loop body
LE: loop exit
PB: predicated region body
PF: predicated region fallthrough
CT: control target
= control target key end

     0   :  { %v2_v0 = vlaneseq  ;;  %s1358_s0 = inlined_call_operand.vmem [shape: f32[2,4,8,8,3], index: 0, kind: input, shape index: {}]   ;;  %s1359_s1 = inlined_call_operand.vmem [shape: f32[2,4,8,8,3], index: 1, kind: output, shape index: {}]  }
   0x1   :  { %v162_v2 = vld [vmem:[%s1358_s0 + $0x10] sm:$0xff]  ;;  %v158_v3 = vld [vmem:[%s1358_s0] sm:$0xff]  ;;  %v164_v4 = vld [vmem:[%s1358_s0 + $0x18] sm:$0xff] }
   0x2   :  { %v3_v1 = vsub.s32 2, %v2_v0  ;;  %v160_v5 = vld [vmem:[%s1358_s0 + $0x8] sm:$0xff]  ;;  %v166_v7 = vld [vmem:[%s1358_s0 + $0x20] sm:$0xff]  ;;  %v172_v8 = vld [vmem:[%s1358_s0 + $0x38] sm:$0xff] }
   0x3   :  { %v168_v6 = vld [vmem:[%s1358_s0 + $0x28] sm:$0xff]  ;;  %v170_v9 = vld [vmem:[%s1358_s0 + $0x30] sm:$0xff]  ;;  %v174_v11 = vld [vmem:[%s1358_s0 + $0x40] sm:$0xff] }
   0x4   :  { %4 = vset.pattern.permute.xlu0 %v3_v1  ;;  %963 = vset.pattern.permute.xlu1 %v3_v1  ;;  %v176_v10 = vld [vmem:[%s1358_s0 + $0x48] sm:$0xff]  ;;  %v180_v12 = vld [vmem:[%s1358_s0 + $0x58] sm:$0xff]  ;;  %v178_v13 = vld [vmem:[%s1358_s0 + $0x50] sm:$0xff] }
   0x5   :  { %302 = vperm.xlu1 %963, %v162_v2   ;;  %290 = vperm.xlu0 %4, %v158_v3   ;;  %v184_v14 = vld [vmem:[%s1358_s0 + $0x68] sm:$0xff]  ;;  %v182_v15 = vld [vmem:[%s1358_s0 + $0x60] sm:$0xff]  ;;  %v188_v16 = vld [vmem:[%s1358_s0 + $0x78] sm:$0xff] }
   0x6   :  { %v186_v17 = vld [vmem:[%s1358_s0 + $0x70] sm:$0xff]  ;;  %v192_v18 = vld [vmem:[%s1358_s0 + $0x88] sm:$0xff]  ;;  %v190_v19 = vld [vmem:[%s1358_s0 + $0x80] sm:$0xff] }
   0x7   :  { %v196_v20 = vld [vmem:[%s1358_s0 + $0x98] sm:$0xff]  ;;  %v194_v21 = vld [vmem:[%s1358_s0 + $0x90] sm:$0xff]  ;;  %v200_v22 = vld [vmem:[%s1358_s0 + $0xa8] sm:$0xff] }
   0x8   :  { %v198_v23 = vld [vmem:[%s1358_s0 + $0xa0] sm:$0xff]  ;;  %v204_v24 = vld [vmem:[%s1358_s0 + $0xb8] sm:$0xff]  ;;  %v202_v25 = vld [vmem:[%s1358_s0 + $0xb0] sm:$0xff] }
   0x9   :  { %308 = vperm.xlu1 %963, %v164_v4   ;;  %296 = vperm.xlu0 %4, %v160_v5   ;;  %v208_v26 = vld [vmem:[%s1358_s0 + $0xc8] sm:$0xff]  ;;  %v206_v27 = vld [vmem:[%s1358_s0 + $0xc0] sm:$0xff]  ;;  %v212_v28 = vld [vmem:[%s1358_s0 + $0xd8] sm:$0xff] }
   0xa   :  { %v210_v29 = vld [vmem:[%s1358_s0 + $0xd0] sm:$0xff]  ;;  %v216_v30 = vld [vmem:[%s1358_s0 + $0xe8] sm:$0xff]  ;;  %v214_v31 = vld [vmem:[%s1358_s0 + $0xe0] sm:$0xff] }
   0xb   :  { %v220_v32 = vld [vmem:[%s1358_s0 + $0xf8] sm:$0xff]  ;;  %v218_v33 = vld [vmem:[%s1358_s0 + $0xf0] sm:$0xff]  ;;  %v224_v34 = vld [vmem:[%s1358_s0 + $0x108] sm:$0xff] }
   0xc   :  { %v222_v35 = vld [vmem:[%s1358_s0 + $0x100] sm:$0xff]  ;;  %v228_v36 = vld [vmem:[%s1358_s0 + $0x118] sm:$0xff]  ;;  %v226_v37 = vld [vmem:[%s1358_s0 + $0x110] sm:$0xff] }
   0xd   :  { %320 = vperm.xlu1 %963, %v168_v6   ;;  %314 = vperm.xlu0 %4, %v166_v7   ;;  %v232_v38 = vld [vmem:[%s1358_s0 + $0x128] sm:$0xff]  ;;  %v230_v39 = vld [vmem:[%s1358_s0 + $0x120] sm:$0xff]  ;;  %v236_v40 = vld [vmem:[%s1358_s0 + $0x138] sm:$0xff] }
   0xe   :  { %v234_v41 = vld [vmem:[%s1358_s0 + $0x130] sm:$0xff]  ;;  %v240_v42 = vld [vmem:[%s1358_s0 + $0x148] sm:$0xff]  ;;  %v238_v43 = vld [vmem:[%s1358_s0 + $0x140] sm:$0xff] }
   0xf   :  { %v244_v44 = vld [vmem:[%s1358_s0 + $0x158] sm:$0xff]  ;;  %v242_v45 = vld [vmem:[%s1358_s0 + $0x150] sm:$0xff]  ;;  %v248_v46 = vld [vmem:[%s1358_s0 + $0x168] sm:$0xff] }
  0x10   :  { %v246_v47 = vld [vmem:[%s1358_s0 + $0x160] sm:$0xff]  ;;  %v252_v48 = vld [vmem:[%s1358_s0 + $0x178] sm:$0xff]  ;;  %v250_v49 = vld [vmem:[%s1358_s0 + $0x170] sm:$0xff] }
  0x11   :  { %332 = vperm.xlu1 %963, %v172_v8   ;;  %326 = vperm.xlu0 %4, %v170_v9   ;;  %v256_v50 = vld [vmem:[%s1358_s0 + $0x188] sm:$0xff]  ;;  %v254_v51 = vld [vmem:[%s1358_s0 + $0x180] sm:$0xff]  ;;  %v260_v52 = vld [vmem:[%s1358_s0 + $0x198] sm:$0xff] }
  0x12   :  { %v258_v53 = vld [vmem:[%s1358_s0 + $0x190] sm:$0xff]  ;;  %v264_v54 = vld [vmem:[%s1358_s0 + $0x1a8] sm:$0xff]  ;;  %v262_v55 = vld [vmem:[%s1358_s0 + $0x1a0] sm:$0xff] }
  0x13   :  { %v268_v56 = vld [vmem:[%s1358_s0 + $0x1b8] sm:$0xff]  ;;  %v266_v57 = vld [vmem:[%s1358_s0 + $0x1b0] sm:$0xff]  ;;  %v272_v58 = vld [vmem:[%s1358_s0 + $0x1c8] sm:$0xff] }
  0x14   :  { %v270_v59 = vld [vmem:[%s1358_s0 + $0x1c0] sm:$0xff]  ;;  %v276_v60 = vld [vmem:[%s1358_s0 + $0x1d8] sm:$0xff]  ;;  %v274_v61 = vld [vmem:[%s1358_s0 + $0x1d0] sm:$0xff] }
  0x15   :  { %344 = vperm.xlu1 %963, %v176_v10   ;;  %338 = vperm.xlu0 %4, %v174_v11   ;;  %v280_v62 = vld [vmem:[%s1358_s0 + $0x1e8] sm:$0xff]  ;;  %v278_v63 = vld [vmem:[%s1358_s0 + $0x1e0] sm:$0xff]  ;;  %v284_v0 = vld [vmem:[%s1358_s0 + $0x1f8] sm:$0xff] }
  0x16   :  { %v282_v1 = vld [vmem:[%s1358_s0 + $0x1f0] sm:$0xff] }
  0x19   :  { %356 = vperm.xlu1 %963, %v180_v12   ;;  %350 = vperm.xlu0 %4, %v178_v13  }
  0x1d   :  { %368 = vperm.xlu1 %963, %v184_v14   ;;  %362 = vperm.xlu0 %4, %v182_v15  }
  0x21   :  { %380 = vperm.xlu1 %963, %v188_v16   ;;  %374 = vperm.xlu0 %4, %v186_v17  }
  0x25   :  { %392 = vperm.xlu1 %963, %v192_v18   ;;  %386 = vperm.xlu0 %4, %v190_v19  }
  0x29   :  { %404 = vperm.xlu1 %963, %v196_v20   ;;  %398 = vperm.xlu0 %4, %v194_v21  }
  0x2d   :  { %416 = vperm.xlu1 %963, %v200_v22   ;;  %410 = vperm.xlu0 %4, %v198_v23  }
  0x31   :  { %428 = vperm.xlu1 %963, %v204_v24   ;;  %422 = vperm.xlu0 %4, %v202_v25  }
  0x35   :  { %440 = vperm.xlu1 %963, %v208_v26   ;;  %434 = vperm.xlu0 %4, %v206_v27  }
  0x39   :  { %452 = vperm.xlu1 %963, %v212_v28   ;;  %446 = vperm.xlu0 %4, %v210_v29  }
  0x3d   :  { %464 = vperm.xlu1 %963, %v216_v30   ;;  %458 = vperm.xlu0 %4, %v214_v31  }
  0x41   :  { %476 = vperm.xlu1 %963, %v220_v32   ;;  %470 = vperm.xlu0 %4, %v218_v33  }
  0x45   :  { %488 = vperm.xlu1 %963, %v224_v34   ;;  %482 = vperm.xlu0 %4, %v222_v35  }
  0x49   :  { %500 = vperm.xlu1 %963, %v228_v36   ;;  %494 = vperm.xlu0 %4, %v226_v37  }
  0x4d   :  { %512 = vperm.xlu1 %963, %v232_v38   ;;  %506 = vperm.xlu0 %4, %v230_v39  }
  0x51   :  { %524 = vperm.xlu1 %963, %v236_v40   ;;  %518 = vperm.xlu0 %4, %v234_v41  }
  0x55   :  { %536 = vperm.xlu1 %963, %v240_v42   ;;  %530 = vperm.xlu0 %4, %v238_v43  }
  0x59   :  { %548 = vperm.xlu1 %963, %v244_v44   ;;  %542 = vperm.xlu0 %4, %v242_v45  }
  0x5d   :  { %560 = vperm.xlu1 %963, %v248_v46   ;;  %554 = vperm.xlu0 %4, %v246_v47  }
  0x61   :  { %572 = vperm.xlu1 %963, %v252_v48   ;;  %566 = vperm.xlu0 %4, %v250_v49  }
  0x65   :  { %584 = vperm.xlu1 %963, %v256_v50   ;;  %578 = vperm.xlu0 %4, %v254_v51  }
  0x69   :  { %596 = vperm.xlu1 %963, %v260_v52   ;;  %590 = vperm.xlu0 %4, %v258_v53  }
  0x6d   :  { %608 = vperm.xlu1 %963, %v264_v54   ;;  %602 = vperm.xlu0 %4, %v262_v55  }
  0x71   :  { %620 = vperm.xlu1 %963, %v268_v56   ;;  %614 = vperm.xlu0 %4, %v266_v57  }
  0x75   :  { %632 = vperm.xlu1 %963, %v272_v58   ;;  %626 = vperm.xlu0 %4, %v270_v59  }
  0x79   :  { %644 = vperm.xlu1 %963, %v276_v60   ;;  %638 = vperm.xlu0 %4, %v274_v61  }
  0x7d   :  { %656 = vperm.xlu1 %963, %v280_v62   ;;  %650 = vperm.xlu0 %4, %v278_v63  }
  0x81   :  { %668 = vperm.xlu1 %963, %v284_v0   ;;  %662 = vperm.xlu0 %4, %v282_v1  }
  0x84   :  { %v303_v2 = vpop.permute.xlu1 %302  ;;  %v291_v3 = vpop.permute.xlu0 %290 }
  0x85   :  { %829 = vst [vmem:[%s1359_s1 + $0x10] sm:$0xff] %v303_v2  ;;  %825 = vst [vmem:[%s1359_s1] sm:$0xff] %v291_v3 }
  0x88   :  { %v309_v4 = vpop.permute.xlu1 %308  ;;  %v297_v5 = vpop.permute.xlu0 %296 }
  0x89   :  { %831 = vst [vmem:[%s1359_s1 + $0x18] sm:$0xff] %v309_v4  ;;  %827 = vst [vmem:[%s1359_s1 + $0x8] sm:$0xff] %v297_v5 }
  0x8c   :  { %v321_v6 = vpop.permute.xlu1 %320  ;;  %v315_v7 = vpop.permute.xlu0 %314 }
  0x8d   :  { %835 = vst [vmem:[%s1359_s1 + $0x28] sm:$0xff] %v321_v6  ;;  %833 = vst [vmem:[%s1359_s1 + $0x20] sm:$0xff] %v315_v7 }
  0x90   :  { %v333_v8 = vpop.permute.xlu1 %332  ;;  %v327_v9 = vpop.permute.xlu0 %326 }
  0x91   :  { %839 = vst [vmem:[%s1359_s1 + $0x38] sm:$0xff] %v333_v8  ;;  %837 = vst [vmem:[%s1359_s1 + $0x30] sm:$0xff] %v327_v9 }
  0x94   :  { %v345_v10 = vpop.permute.xlu1 %344  ;;  %v339_v11 = vpop.permute.xlu0 %338 }
  0x95   :  { %843 = vst [vmem:[%s1359_s1 + $0x48] sm:$0xff] %v345_v10  ;;  %841 = vst [vmem:[%s1359_s1 + $0x40] sm:$0xff] %v339_v11 }
  0x98   :  { %v357_v12 = vpop.permute.xlu1 %356  ;;  %v351_v13 = vpop.permute.xlu0 %350 }
  0x99   :  { %847 = vst [vmem:[%s1359_s1 + $0x58] sm:$0xff] %v357_v12  ;;  %845 = vst [vmem:[%s1359_s1 + $0x50] sm:$0xff] %v351_v13 }
  0x9c   :  { %v369_v14 = vpop.permute.xlu1 %368  ;;  %v363_v15 = vpop.permute.xlu0 %362 }
  0x9d   :  { %851 = vst [vmem:[%s1359_s1 + $0x68] sm:$0xff] %v369_v14  ;;  %849 = vst [vmem:[%s1359_s1 + $0x60] sm:$0xff] %v363_v15 }
  0xa0   :  { %v381_v16 = vpop.permute.xlu1 %380  ;;  %v375_v17 = vpop.permute.xlu0 %374 }
  0xa1   :  { %855 = vst [vmem:[%s1359_s1 + $0x78] sm:$0xff] %v381_v16  ;;  %853 = vst [vmem:[%s1359_s1 + $0x70] sm:$0xff] %v375_v17 }
  0xa4   :  { %v393_v18 = vpop.permute.xlu1 %392  ;;  %v387_v19 = vpop.permute.xlu0 %386 }
  0xa5   :  { %859 = vst [vmem:[%s1359_s1 + $0x88] sm:$0xff] %v393_v18  ;;  %857 = vst [vmem:[%s1359_s1 + $0x80] sm:$0xff] %v387_v19 }
  0xa8   :  { %v405_v20 = vpop.permute.xlu1 %404  ;;  %v399_v21 = vpop.permute.xlu0 %398 }
  0xa9   :  { %863 = vst [vmem:[%s1359_s1 + $0x98] sm:$0xff] %v405_v20  ;;  %861 = vst [vmem:[%s1359_s1 + $0x90] sm:$0xff] %v399_v21 }
  0xac   :  { %v417_v22 = vpop.permute.xlu1 %416  ;;  %v411_v23 = vpop.permute.xlu0 %410 }
  0xad   :  { %867 = vst [vmem:[%s1359_s1 + $0xa8] sm:$0xff] %v417_v22  ;;  %865 = vst [vmem:[%s1359_s1 + $0xa0] sm:$0xff] %v411_v23 }
  0xb0   :  { %v429_v24 = vpop.permute.xlu1 %428  ;;  %v423_v25 = vpop.permute.xlu0 %422 }
  0xb1   :  { %871 = vst [vmem:[%s1359_s1 + $0xb8] sm:$0xff] %v429_v24  ;;  %869 = vst [vmem:[%s1359_s1 + $0xb0] sm:$0xff] %v423_v25 }
  0xb4   :  { %v441_v26 = vpop.permute.xlu1 %440  ;;  %v435_v27 = vpop.permute.xlu0 %434 }
  0xb5   :  { %875 = vst [vmem:[%s1359_s1 + $0xc8] sm:$0xff] %v441_v26  ;;  %873 = vst [vmem:[%s1359_s1 + $0xc0] sm:$0xff] %v435_v27 }
  0xb8   :  { %v453_v28 = vpop.permute.xlu1 %452  ;;  %v447_v29 = vpop.permute.xlu0 %446 }
  0xb9   :  { %879 = vst [vmem:[%s1359_s1 + $0xd8] sm:$0xff] %v453_v28  ;;  %877 = vst [vmem:[%s1359_s1 + $0xd0] sm:$0xff] %v447_v29 }
  0xbc   :  { %v465_v30 = vpop.permute.xlu1 %464  ;;  %v459_v31 = vpop.permute.xlu0 %458 }
  0xbd   :  { %883 = vst [vmem:[%s1359_s1 + $0xe8] sm:$0xff] %v465_v30  ;;  %881 = vst [vmem:[%s1359_s1 + $0xe0] sm:$0xff] %v459_v31 }
  0xc0   :  { %v477_v32 = vpop.permute.xlu1 %476  ;;  %v471_v33 = vpop.permute.xlu0 %470 }
  0xc1   :  { %887 = vst [vmem:[%s1359_s1 + $0xf8] sm:$0xff] %v477_v32  ;;  %885 = vst [vmem:[%s1359_s1 + $0xf0] sm:$0xff] %v471_v33 }
  0xc4   :  { %v489_v34 = vpop.permute.xlu1 %488  ;;  %v483_v35 = vpop.permute.xlu0 %482 }
  0xc5   :  { %891 = vst [vmem:[%s1359_s1 + $0x108] sm:$0xff] %v489_v34  ;;  %889 = vst [vmem:[%s1359_s1 + $0x100] sm:$0xff] %v483_v35 }
  0xc8   :  { %v501_v36 = vpop.permute.xlu1 %500  ;;  %v495_v37 = vpop.permute.xlu0 %494 }
  0xc9   :  { %895 = vst [vmem:[%s1359_s1 + $0x118] sm:$0xff] %v501_v36  ;;  %893 = vst [vmem:[%s1359_s1 + $0x110] sm:$0xff] %v495_v37 }
  0xcc   :  { %v513_v38 = vpop.permute.xlu1 %512  ;;  %v507_v39 = vpop.permute.xlu0 %506 }
  0xcd   :  { %899 = vst [vmem:[%s1359_s1 + $0x128] sm:$0xff] %v513_v38  ;;  %897 = vst [vmem:[%s1359_s1 + $0x120] sm:$0xff] %v507_v39 }
  0xd0   :  { %v525_v40 = vpop.permute.xlu1 %524  ;;  %v519_v41 = vpop.permute.xlu0 %518 }
  0xd1   :  { %903 = vst [vmem:[%s1359_s1 + $0x138] sm:$0xff] %v525_v40  ;;  %901 = vst [vmem:[%s1359_s1 + $0x130] sm:$0xff] %v519_v41 }
  0xd4   :  { %v537_v42 = vpop.permute.xlu1 %536  ;;  %v531_v43 = vpop.permute.xlu0 %530 }
  0xd5   :  { %907 = vst [vmem:[%s1359_s1 + $0x148] sm:$0xff] %v537_v42  ;;  %905 = vst [vmem:[%s1359_s1 + $0x140] sm:$0xff] %v531_v43 }
  0xd8   :  { %v549_v44 = vpop.permute.xlu1 %548  ;;  %v543_v45 = vpop.permute.xlu0 %542 }
  0xd9   :  { %911 = vst [vmem:[%s1359_s1 + $0x158] sm:$0xff] %v549_v44  ;;  %909 = vst [vmem:[%s1359_s1 + $0x150] sm:$0xff] %v543_v45 }
  0xdc   :  { %v561_v46 = vpop.permute.xlu1 %560  ;;  %v555_v47 = vpop.permute.xlu0 %554 }
  0xdd   :  { %915 = vst [vmem:[%s1359_s1 + $0x168] sm:$0xff] %v561_v46  ;;  %913 = vst [vmem:[%s1359_s1 + $0x160] sm:$0xff] %v555_v47 }
  0xe0   :  { %v573_v48 = vpop.permute.xlu1 %572  ;;  %v567_v49 = vpop.permute.xlu0 %566 }
  0xe1   :  { %919 = vst [vmem:[%s1359_s1 + $0x178] sm:$0xff] %v573_v48  ;;  %917 = vst [vmem:[%s1359_s1 + $0x170] sm:$0xff] %v567_v49 }
  0xe4   :  { %v585_v50 = vpop.permute.xlu1 %584  ;;  %v579_v51 = vpop.permute.xlu0 %578 }
  0xe5   :  { %923 = vst [vmem:[%s1359_s1 + $0x188] sm:$0xff] %v585_v50  ;;  %921 = vst [vmem:[%s1359_s1 + $0x180] sm:$0xff] %v579_v51 }
  0xe8   :  { %v597_v52 = vpop.permute.xlu1 %596  ;;  %v591_v53 = vpop.permute.xlu0 %590 }
  0xe9   :  { %927 = vst [vmem:[%s1359_s1 + $0x198] sm:$0xff] %v597_v52  ;;  %925 = vst [vmem:[%s1359_s1 + $0x190] sm:$0xff] %v591_v53 }
  0xec   :  { %v609_v54 = vpop.permute.xlu1 %608  ;;  %v603_v55 = vpop.permute.xlu0 %602 }
  0xed   :  { %931 = vst [vmem:[%s1359_s1 + $0x1a8] sm:$0xff] %v609_v54  ;;  %929 = vst [vmem:[%s1359_s1 + $0x1a0] sm:$0xff] %v603_v55 }
  0xf0   :  { %v621_v56 = vpop.permute.xlu1 %620  ;;  %v615_v57 = vpop.permute.xlu0 %614 }
  0xf1   :  { %935 = vst [vmem:[%s1359_s1 + $0x1b8] sm:$0xff] %v621_v56  ;;  %933 = vst [vmem:[%s1359_s1 + $0x1b0] sm:$0xff] %v615_v57 }
  0xf4   :  { %v633_v58 = vpop.permute.xlu1 %632  ;;  %v627_v59 = vpop.permute.xlu0 %626 }
  0xf5   :  { %939 = vst [vmem:[%s1359_s1 + $0x1c8] sm:$0xff] %v633_v58  ;;  %937 = vst [vmem:[%s1359_s1 + $0x1c0] sm:$0xff] %v627_v59 }
  0xf8   :  { %v645_v60 = vpop.permute.xlu1 %644  ;;  %v639_v61 = vpop.permute.xlu0 %638 }
  0xf9   :  { %943 = vst [vmem:[%s1359_s1 + $0x1d8] sm:$0xff] %v645_v60  ;;  %941 = vst [vmem:[%s1359_s1 + $0x1d0] sm:$0xff] %v639_v61 }
  0xfc   :  { %v657_v62 = vpop.permute.xlu1 %656  ;;  %v651_v63 = vpop.permute.xlu0 %650 }
  0xfd   :  { %947 = vst [vmem:[%s1359_s1 + $0x1e8] sm:$0xff] %v657_v62  ;;  %945 = vst [vmem:[%s1359_s1 + $0x1e0] sm:$0xff] %v651_v63 }
 0x100   :  { %v669_v0 = vpop.permute.xlu1 %668  ;;  %v663_v1 = vpop.permute.xlu0 %662 }
 0x101   :  { %951 = vst [vmem:[%s1359_s1 + $0x1f8] sm:$0xff] %v669_v0  ;;  %949 = vst [vmem:[%s1359_s1 + $0x1f0] sm:$0xff] %v663_v1 }

</bundles_post_ra>
